<compile_context>
chip_gen: v5e
topology: v5e:2x2
jax: 0.10.0
libtpu: 0.0.40
codegen_flags: <defaults>
</compile_context>

<pallas_src>
import jax
import jax.numpy as jnp
from jax.experimental import pallas as pl
from jax.experimental.pallas import tpu as pltpu


def _cdiv(a, b):
    return -(-a // b)


def _round_up(a, m):
    return _cdiv(a, m) * m


def _make_mlp_kernel(n_layers, compute_dtype):
    """Kernel computing an n_layers-deep MLP with ReLU between layers."""

    def kernel(*refs):
        # refs = (x_ref, w0, b0, w1, b1, ..., o_ref)
        x_ref = refs[0]
        o_ref = refs[-1]
        prm = refs[1:-1]

        # In-kernel downcast: x streams from HBM as f32, goes to the MXU as bf16.
        h = x_ref[...].astype(compute_dtype)
        for j in range(n_layers):
            w = prm[2 * j][...]
            b = prm[2 * j + 1][...]
            # MXU matmul with f32 accumulation; bias add / ReLU stay in f32.
            h = jnp.dot(h, w, preferred_element_type=jnp.float32) + b
            if j != n_layers - 1:
                h = jnp.maximum(h, 0.0).astype(compute_dtype)
        o_ref[...] = h.astype(o_ref.dtype)

    return kernel


def pack_fcff_params(params, *, group=8, compute_dtype=jnp.bfloat16):
    """One-time (hoisted) packing of FCFFNet params for the lane-packed kernel.

    Every weight W[in,out] becomes a block-diagonal [G*in, G*out] bf16 matrix,
    every bias becomes a lane-tiled [1, G*out] f32 row.  Call once and reuse
    the result across forward calls.
    """
    G = int(group)
    eye = jnp.eye(G, dtype=jnp.float32)
    flat, dims = [], []
    for (w, b) in params:
        fan_in, fan_out = w.shape
        dims.append((int(fan_in), int(fan_out)))
        w_blk = jnp.kron(eye, w.astype(jnp.float32)).astype(compute_dtype)
        b_blk = jnp.tile(jnp.reshape(b, (1, -1)).astype(jnp.float32), (1, G))
        flat += [w_blk, b_blk]
    return {
        "group": G,
        "flat": tuple(jax.device_put(a) for a in flat),
        "dims": tuple(dims),
        "compute_dtype": compute_dtype,
    }


def fcff_net_forward(x, packed, *, batch_tile=16384, min_steps=2,
                     out_dtype=jnp.float32, x_buffers=2, vmem_limit_bytes=None):
    """FCFFNet forward pass as a single pallas_call.

    x:          [B, d_in] float32
    packed:     result of pack_fcff_params()
    batch_tile: target input rows per grid step (tile is derived from it).
    min_steps:  lower bound on grid steps (>=2 so v7x megacore can shard).
    out_dtype:  jnp.float32 (module semantics) or jnp.bfloat16 to halve
                output writeback if the consumer tolerates it.
    x_buffers:  pipeline depth for the x BlockSpec (raise to 3 only if xprof
                shows exposed input DMA).
    """
    G = packed["group"]
    compute_dtype = packed["compute_dtype"]
    dims = packed["dims"]
    flat = packed["flat"]
    n_layers = len(dims)
    d_in, d_out = dims[0][0], dims[-1][1]

    B = x.shape[0]
    assert x.shape[1] == d_in

    # --- tiling: pick the number of grid steps first, pad at most one tile ---
    P = _cdiv(B, G)                                   # packed rows total
    n_steps = max(int(min_steps), _cdiv(B, int(batch_tile)))
    tp = _round_up(max(1, _cdiv(P, n_steps)), 16)     # packed rows per step
    grid_steps = _cdiv(P, tp)
    P_pad = grid_steps * tp
    B_pad = P_pad * G

    if B_pad != B:
        # Padded rows produce garbage (bias through ReLU); sliced off below.
        x = jnp.pad(x, ((0, B_pad - B), (0, 0)))
    xp = x.reshape(P_pad, G * d_in)                   # f32; cast happens in-kernel

    # --- BlockSpecs ---
    x_spec_kwargs = {}
    if int(x_buffers) != 2:
        x_spec_kwargs = dict(pipeline_mode=pl.Buffered(int(x_buffers)))
    in_specs = [pl.BlockSpec((tp, G * d_in), lambda i: (i, 0), **x_spec_kwargs)]
    for arr in flat:
        # Whole-array block + constant index_map: fetched once, VMEM-resident.
        in_specs.append(pl.BlockSpec(arr.shape, lambda i: (0, 0)))
    out_specs = pl.BlockSpec((tp, G * d_out), lambda i: (i, 0))

    # --- explicit VMEM budget (v7x has only 64 MiB physical per TC) ---
    if vmem_limit_bytes is None:
        max_feat = max(max(fi, fo) for fi, fo in dims)
        est = (2 * tp * G * d_in * 4                                   # x (dbl-buf)
               + 2 * tp * G * d_out * jnp.dtype(out_dtype).itemsize    # out (dbl-buf)
               + 2 * sum(a.size * a.dtype.itemsize for a in flat)      # weights/biases
               + 4 * tp * G * max_feat * 4)                            # f32 intermediates
        vmem_limit_bytes = int(min(64 << 20, max(32 << 20, 2 * est)))

    out_packed = pl.pallas_call(
        _make_mlp_kernel(n_layers, compute_dtype),
        out_shape=jax.ShapeDtypeStruct((P_pad, G * d_out), out_dtype),
        grid_spec=pltpu.PrefetchScalarGridSpec(
            num_scalar_prefetch=0,
            grid=(grid_steps,),
            in_specs=in_specs,
            out_specs=out_specs,
        ),
        compiler_params=pltpu.CompilerParams(
            dimension_semantics=("parallel",),  # batch axis: megacore-shardable
            vmem_limit_bytes=vmem_limit_bytes,
        ),
    )(xp, *flat)

    return out_packed.reshape(B_pad, d_out)[:B]


def init_params(layer_sizes, key):
    """Deterministic init mirroring torch.nn.Linear default (uniform +-1/sqrt(fan_in))."""
    params = []
    for j in range(len(layer_sizes) - 1):
        fan_in, fan_out = layer_sizes[j], layer_sizes[j + 1]
        key, kw, kb = jax.random.split(key, 3)
        bound = 1.0 / jnp.sqrt(jnp.float32(fan_in))
        w = jax.random.uniform(kw, (fan_in, fan_out), jnp.float32, -bound, bound)
        b = jax.random.uniform(kb, (1, fan_out), jnp.float32, -bound, bound)
        params.append((w, b))
    return params


def reference_forward(x, params, compute_dtype=jnp.float32):
    """Plain-JAX reference; compute_dtype=bfloat16 matches the kernel's precision."""
    n = len(params)
    h = x.astype(compute_dtype)
    for j, (w, b) in enumerate(params):
        h = jnp.dot(h, w.astype(compute_dtype), preferred_element_type=jnp.float32)
        h = h + jnp.reshape(b, (1, -1)).astype(jnp.float32)
        if j != n - 1:
            h = jnp.maximum(h, 0.0).astype(compute_dtype)
    return h.astype(jnp.float32)


if __name__ == "__main__":
    # FCFFNet([16, 32, 32, 8], nn.ReLU, normalize=False)
    layer_sizes = [16, 32, 32, 8]
    batch = 1000  # deliberately ragged: exercises bounded padding + multi-step grid

    key = jax.random.PRNGKey(0)
    key, kx = jax.random.split(key)
    x = jax.random.normal(kx, (batch, layer_sizes[0]), dtype=jnp.float32)
    params = init_params(layer_sizes, key)

    # Pack weights once (hoisted); G=8 keeps the kernel HBM-bound on all chips.
    packed = pack_fcff_params(params, group=8)

    # Small batch_tile so the demo still runs a multi-step, pipelined grid.
    out = fcff_net_forward(x, packed, batch_tile=256)
    out = jax.block_until_ready(out)

    assert out.shape == (batch, layer_sizes[-1])
    assert out.dtype == jnp.float32

    # Matched-precision reference (bf16 operands, f32 accumulation) -> tight tol.
    ref_bf16 = reference_forward(x, params, compute_dtype=jnp.bfloat16)
    assert jnp.allclose(out, ref_bf16, atol=1e-3, rtol=1e-3), "mismatch vs bf16 reference"

    # Full-f32 (PyTorch-equivalent) math -> loose tol, sanity check of semantics.
    ref_f32 = reference_forward(x, params, compute_dtype=jnp.float32)
    assert jnp.allclose(out, ref_f32, atol=5e-2, rtol=5e-2), "mismatch vs f32 reference"

    print("KERNEL_OK")
</pallas_src>

<mosaic_0001>
module attributes {stable_mosaic.version = 11 : i64} {
  func.func @kernel(%arg0: i32, %arg1: memref<32x128xf32, #tpu.memory_space<vmem>>, %arg2: memref<128x256xbf16, #tpu.memory_space<vmem>>, %arg3: memref<1x256xf32, #tpu.memory_space<vmem>>, %arg4: memref<256x256xbf16, #tpu.memory_space<vmem>>, %arg5: memref<1x256xf32, #tpu.memory_space<vmem>>, %arg6: memref<256x64xbf16, #tpu.memory_space<vmem>>, %arg7: memref<1x64xf32, #tpu.memory_space<vmem>>, %arg8: memref<32x64xf32, #tpu.memory_space<vmem>>) attributes {dimension_semantics = [#tpu.dimension_semantics<parallel>], iteration_bounds = array<i64: 4>, scalar_prefetch = 0 : i64, scratch_operands = 0 : i64, tpu.core_type = #tpu.core_type<tc>, window_params = [{transform_indices = @transform_0, window_bounds = array<i64: 32, 128>}, {pipeline_mode = #tpu.pipeline_mode<synchronous>, transform_indices = @transform_1, window_bounds = array<i64: 128, 256>}, {pipeline_mode = #tpu.pipeline_mode<synchronous>, transform_indices = @transform_2, window_bounds = array<i64: 1, 256>}, {pipeline_mode = #tpu.pipeline_mode<synchronous>, transform_indices = @transform_3, window_bounds = array<i64: 256, 256>}, {pipeline_mode = #tpu.pipeline_mode<synchronous>, transform_indices = @transform_4, window_bounds = array<i64: 1, 256>}, {pipeline_mode = #tpu.pipeline_mode<synchronous>, transform_indices = @transform_5, window_bounds = array<i64: 256, 64>}, {pipeline_mode = #tpu.pipeline_mode<synchronous>, transform_indices = @transform_6, window_bounds = array<i64: 1, 64>}, {transform_indices = @transform_7, window_bounds = array<i64: 32, 64>}]} {
    %c0 = arith.constant 0 : index
    %c0_0 = arith.constant 0 : index
    %0 = vector.load %arg1[%c0, %c0_0] : memref<32x128xf32, #tpu.memory_space<vmem>>, vector<32x128xf32>
    %1 = arith.truncf %0 : vector<32x128xf32> to vector<32x128xbf16>
    %c0_1 = arith.constant 0 : index
    %c0_2 = arith.constant 0 : index
    %2 = vector.load %arg2[%c0_1, %c0_2] : memref<128x256xbf16, #tpu.memory_space<vmem>>, vector<128x256xbf16>
    %c0_3 = arith.constant 0 : index
    %c0_4 = arith.constant 0 : index
    %3 = vector.load %arg3[%c0_3, %c0_4] : memref<1x256xf32, #tpu.memory_space<vmem>>, vector<1x256xf32>
    %cst = arith.constant dense<0.000000e+00> : vector<32x256xf32>
    %4 = tpu.matmul %1, %2, %cst {dimension_numbers = #tpu.dot_dimension_numbers<[1], [0], [0], [1], [0, 0, 1, 1], [], []>} : vector<32x128xbf16>, vector<128x256xbf16>, vector<32x256xf32> -> vector<32x256xf32>
    %5 = vector.broadcast %3 : vector<1x256xf32> to vector<32x256xf32>
    %6 = arith.addf %4, %5 : vector<32x256xf32>
    %cst_5 = arith.constant 0.000000e+00 : f32
    %7 = vector.broadcast %cst_5 : f32 to vector<32x256xf32>
    %8 = arith.maximumf %6, %7 : vector<32x256xf32>
    %9 = arith.truncf %8 : vector<32x256xf32> to vector<32x256xbf16>
    %c0_6 = arith.constant 0 : index
    %c0_7 = arith.constant 0 : index
    %10 = vector.load %arg4[%c0_6, %c0_7] : memref<256x256xbf16, #tpu.memory_space<vmem>>, vector<256x256xbf16>
    %c0_8 = arith.constant 0 : index
    %c0_9 = arith.constant 0 : index
    %11 = vector.load %arg5[%c0_8, %c0_9] : memref<1x256xf32, #tpu.memory_space<vmem>>, vector<1x256xf32>
    %cst_10 = arith.constant dense<0.000000e+00> : vector<32x256xf32>
    %12 = tpu.matmul %9, %10, %cst_10 {dimension_numbers = #tpu.dot_dimension_numbers<[1], [0], [0], [1], [0, 0, 1, 1], [], []>} : vector<32x256xbf16>, vector<256x256xbf16>, vector<32x256xf32> -> vector<32x256xf32>
    %13 = vector.broadcast %11 : vector<1x256xf32> to vector<32x256xf32>
    %14 = arith.addf %12, %13 : vector<32x256xf32>
    %cst_11 = arith.constant 0.000000e+00 : f32
    %15 = vector.broadcast %cst_11 : f32 to vector<32x256xf32>
    %16 = arith.maximumf %14, %15 : vector<32x256xf32>
    %17 = arith.truncf %16 : vector<32x256xf32> to vector<32x256xbf16>
    %c0_12 = arith.constant 0 : index
    %c0_13 = arith.constant 0 : index
    %18 = vector.load %arg6[%c0_12, %c0_13] : memref<256x64xbf16, #tpu.memory_space<vmem>>, vector<256x64xbf16>
    %c0_14 = arith.constant 0 : index
    %c0_15 = arith.constant 0 : index
    %19 = vector.load %arg7[%c0_14, %c0_15] : memref<1x64xf32, #tpu.memory_space<vmem>>, vector<1x64xf32>
    %cst_16 = arith.constant dense<0.000000e+00> : vector<32x64xf32>
    %20 = tpu.matmul %17, %18, %cst_16 {dimension_numbers = #tpu.dot_dimension_numbers<[1], [0], [0], [1], [0, 0, 1, 1], [], []>} : vector<32x256xbf16>, vector<256x64xbf16>, vector<32x64xf32> -> vector<32x64xf32>
    %21 = vector.broadcast %19 : vector<1x64xf32> to vector<32x64xf32>
    %22 = arith.addf %20, %21 : vector<32x64xf32>
    %c0_17 = arith.constant 0 : index
    %c0_18 = arith.constant 0 : index
    %23 = vector.load %arg8[%c0_17, %c0_18] : memref<32x64xf32, #tpu.memory_space<vmem>>, vector<32x64xf32>
    tpu.vector_store %arg8[%c0_17, %c0_18], %22 {strides = array<i32>} : memref<32x64xf32, #tpu.memory_space<vmem>>, vector<32x64xf32>,
    return
  }
  func.func @transform_0(%arg0: i32) -> (i32, i32) {
    %c0_i32 = arith.constant 0 : i32
    %c0_i32_0 = arith.constant 0 : i32
    return %arg0, %c0_i32 : i32, i32
  }
  func.func @transform_1(%arg0: i32) -> (i32, i32) {
    %c0_i32 = arith.constant 0 : i32
    %c0_i32_0 = arith.constant 0 : i32
    %c0_i32_1 = arith.constant 0 : i32
    return %c0_i32, %c0_i32_0 : i32, i32
  }
  func.func @transform_2(%arg0: i32) -> (i32, i32) {
    %c0_i32 = arith.constant 0 : i32
    %c0_i32_0 = arith.constant 0 : i32
    %c0_i32_1 = arith.constant 0 : i32
    return %c0_i32, %c0_i32_0 : i32, i32
  }
  func.func @transform_3(%arg0: i32) -> (i32, i32) {
    %c0_i32 = arith.constant 0 : i32
    %c0_i32_0 = arith.constant 0 : i32
    %c0_i32_1 = arith.constant 0 : i32
    return %c0_i32, %c0_i32_0 : i32, i32
  }
  func.func @transform_4(%arg0: i32) -> (i32, i32) {
    %c0_i32 = arith.constant 0 : i32
    %c0_i32_0 = arith.constant 0 : i32
    %c0_i32_1 = arith.constant 0 : i32
    return %c0_i32, %c0_i32_0 : i32, i32
  }
  func.func @transform_5(%arg0: i32) -> (i32, i32) {
    %c0_i32 = arith.constant 0 : i32
    %c0_i32_0 = arith.constant 0 : i32
    %c0_i32_1 = arith.constant 0 : i32
    return %c0_i32, %c0_i32_0 : i32, i32
  }
  func.func @transform_6(%arg0: i32) -> (i32, i32) {
    %c0_i32 = arith.constant 0 : i32
    %c0_i32_0 = arith.constant 0 : i32
    %c0_i32_1 = arith.constant 0 : i32
    return %c0_i32, %c0_i32_0 : i32, i32
  }
  func.func @transform_7(%arg0: i32) -> (i32, i32) {
    %c0_i32 = arith.constant 0 : i32
    %c0_i32_0 = arith.constant 0 : i32
    return %arg0, %c0_i32 : i32, i32
  }
}

</mosaic_0001>

<bundles_post_ra>
// kernel: tpu_custom_call.1
= control target key start
LH: loop header
LB: loop body
LE: loop exit
PB: predicated region body
PF: predicated region fallthrough
CT: control target
= control target key end

     0   :  { %12 = vsyncpa [#allocation3], 0  ;;  %s1623_s0 = inlined_call_operand.vmem [shape: f32[128,128], index: 0, kind: input, shape index: {}]   ;;  %s1624_s1 = inlined_call_operand.hbm [shape: bf16[128,256], index: 1, kind: input, shape index: {}]   ;;  %s1625_s2 = inlined_call_operand.vmem [shape: f32[1,256], index: 2, kind: input, shape index: {}]   ;;  %s1626_s3 = inlined_call_operand.hbm [shape: bf16[256,256], index: 3, kind: input, shape index: {}]   ;;  %s1627_s4 = inlined_call_operand.vmem [shape: f32[1,256], index: 4, kind: input, shape index: {}]   ;;  %s1628_s5 = inlined_call_operand.vmem [shape: bf16[256,64], index: 5, kind: input, shape index: {}]   ;;  %s1629_s6 = inlined_call_operand.vmem [shape: f32[1,64], index: 6, kind: input, shape index: {}]   ;;  %s1630_s7 = inlined_call_operand.vmem [shape: f32[128,64], index: 7, kind: output, shape index: {}]  }
   0x1   :  { %13 = vsyncpa [#allocation5], 0  ;;  %s1500_s24 = smov 0  }
   0x2 LB: > { %s213_s27 = sshll.u32 %s1624_s1, 4  ;;  %s1013_s28 = sadd.s32 4294967295, %s1454_s24   ;;  %s1454_s24 = sphi %s1500_s24, %s19_s24   ;;  %s214_s27 = int_to_ptr.hbm [resolvable:$true] %s213_s27 }
   0x3   : > { %p1015_p0 = scmp.ge.s32.totalorder %s1454_s24, 1  ;;  %p202_p1 = scmp.lt.s32.totalorder %s1454_s24, 5 }
   0x4   : > { %p1513_p2 = scmp.eq.s32.totalorder %s1013_s28, 0  ;;  %s1456_s8 = smov [#allocation2]  }
   0x5   : > { %p1517_p3 = pnand %p1015_p0, %p202_p1  ;;  %s215_s9 = sshll.u32 %s1456_s8, 4  ;;  %s216_s9 = int_to_ptr.vmem [resolvable:$true] %s215_s9 }
   0x6   : > { %s230_s12 = sshll.u32 %s1626_s3, 4  ;;  %s1457_s13 = smov [#allocation4]   ;;  %s231_s12 = int_to_ptr.hbm [resolvable:$true] %s230_s12 }
   0x7   : > { %p1356_p4 = pneg %p1517_p3  ;;  %s232_s14 = sshll.u32 %s1457_s13, 4  ;;  %s233_s14 = int_to_ptr.vmem [resolvable:$true] %s232_s14 }
   0x8   : > { %s1458_s15 = smov 128   ;;  %s1459_s16 = smov 8  }
   0x9   : > { %p1357_p5 = pnand %p1513_p2, %p1356_p4  ;;  %266 = sbr.rel (%p1517_p3) target bundleno = 500 (0x1f4), region = 48 }
   0xb   : > { %1359 = dma.hbm_to_vmem [thread:$0]  (!%p1357_p5), %s214_s27, 2048, %s216_s9, [#allocation3], %s1458_s15, %s1458_s15, %s1459_s16  }
   0xc   : > { %1362 = dma.hbm_to_vmem [thread:$0]  (!%p1357_p5), %s231_s12, 4096, %s233_s14, [#allocation5], %s1458_s15, %s1458_s15, %s1459_s16  }
   0xe   : > { %1445 = dma.done.wait (%p1513_p2), [#allocation3], 2048  }
   0xf   : > { %1447 = vsyncadd (%p1513_p2), [#allocation3], 4294965248 }
  0x10   : > { %1449 = dma.done.wait (%p1513_p2), [#allocation5], 4096  }
  0x11   : > { %1451 = vsyncadd (%p1513_p2), [#allocation5], 4294963200  ;;  %v1084_v0 = vld [vmem:[#allocation2 + $0x70] sm:$0xf]  ;;  %v1299_v1 = vld [vmem:[#allocation2 + $0x74] sm:$0xf0] }
  0x12   : > { %v1298_v2 = vld [vmem:[#allocation2 + $0x74] sm:$0xf]  ;;  %v1085_v3 = vor.u32 %v1299_v1, %v1084_v0  ;;  %v1086_v4 = vld [vmem:[#allocation2 + $0x78] sm:$0xf0]  ;;  %v1076_v5 = vld [vmem:[#allocation2 + $0x60] sm:$0xf] }
  0x13   : > { %v1297_v6 = vld [vmem:[#allocation2 + $0x64] sm:$0xf0]  ;;  %v1089_v7 = vor.u32 %v1298_v2, %v1086_v4  ;;  %v1296_v8 = vld [vmem:[#allocation2 + $0x64] sm:$0xf]  ;;  %v1078_v9 = vld [vmem:[#allocation2 + $0x68] sm:$0xf0] }
  0x14   : > { %424 = vmatpush.bf16.msra.mxu0 %v1085_v3  ;;  %v1077_v10 = vor.u32 %v1297_v6, %v1076_v5  ;;  %v1081_v11 = vor.u32 %v1296_v8, %v1078_v9  ;;  %v1068_v12 = vld [vmem:[#allocation2 + $0x50] sm:$0xf]  ;;  %v1295_v13 = vld [vmem:[#allocation2 + $0x54] sm:$0xf0]  ;;  %v1294_v14 = vld [vmem:[#allocation2 + $0x54] sm:$0xf] }
  0x15   : > { %443 = vmatpush.bf16.msra.mxu1 %v1089_v7  ;;  %v1070_v15 = vld [vmem:[#allocation2 + $0x58] sm:$0xf0]  ;;  %v1069_v16 = vor.u32 %v1295_v13, %v1068_v12  ;;  %s1022_s17 = sshll.u32 %s1013_s28, 2  ;;  %v1060_v18 = vld [vmem:[#allocation2 + $0x40] sm:$0xf]  ;;  %vm930_vm0 = vcmask 523264  }
  0x16   : > { %v1073_v17 = vor.u32 %v1294_v14, %v1070_v15  ;;  %v1293_v19 = vld [vmem:[#allocation2 + $0x44] sm:$0xf0]  ;;  %v1292_v20 = vld [vmem:[#allocation2 + $0x44] sm:$0xf]  ;;  %v1062_v21 = vld [vmem:[#allocation2 + $0x48] sm:$0xf0] }
  0x17   : > { %p305_p6 = scmp.lt.s32.totalorder %s1022_s17, 15  ;;  %v1061_v22 = vor.u32 %v1293_v19, %v1060_v18  ;;  %v1065_v23 = vor.u32 %v1292_v20, %v1062_v21  ;;  %v1052_v24 = vld [vmem:[#allocation2 + $0x30] sm:$0xf]  ;;  %v1291_v25 = vld [vmem:[#allocation2 + $0x34] sm:$0xf0] }
  0x18   : > { %425 = vmatpush.bf16.msra.mxu0 %v1077_v10  ;;  %v1290_v26 = vld [vmem:[#allocation2 + $0x34] sm:$0xf]  ;;  %v1054_v27 = vld [vmem:[#allocation2 + $0x38] sm:$0xf0]  ;;  %v1053_v28 = vor.u32 %v1291_v25, %v1052_v24  ;;  %v1044_v30 = vld [vmem:[#allocation2 + $0x20] sm:$0xf] }
  0x19   : > { %444 = vmatpush.bf16.msra.mxu1 %v1081_v11  ;;  %s1634_s17 = smov (!%p305_p6, %s1022_s17), 15  ;;  %v1057_v29 = vor.u32 %v1290_v26, %v1054_v27  ;;  %v1289_v31 = vld [vmem:[#allocation2 + $0x24] sm:$0xf0]  ;;  %v1288_v32 = vld [vmem:[#allocation2 + $0x24] sm:$0xf] }
  0x1a   : > { %v1046_v33 = vld [vmem:[#allocation2 + $0x28] sm:$0xf0]  ;;  %s1023_s18 = sshll.u32 %s1634_s17, 3  ;;  %v1045_v34 = vor.u32 %v1289_v31, %v1044_v30  ;;  %v1148_v35 = vld [vmem:[#allocation4 + $0x70] sm:$0xf] }
  0x1b   : > { %v1315_v36 = vld [vmem:[#allocation4 + $0x74] sm:$0xf0]  ;;  %v1212_v37 = vld [vmem:[#allocation4 + $0xf0] sm:$0xf]  ;;  %v1049_v38 = vor.u32 %v1288_v32, %v1046_v33  ;;  %v1286_v43 = vld [vmem:[#allocation2 + $0x14] sm:$0xf]  ;;  %s1548_s21 = scalar_lea.vmem %s1623_s0, %s1023_s18  ;;  %s314_s22 = scalar_lea.vmem %s1630_s7, %s1023_s18 }
  0x1c   : > { %426 = vmatpush.bf16.msra.mxu0 %v1069_v16  ;;  %v1036_v39 = vld [vmem:[#allocation2 + $0x10] sm:$0xf]  ;;  %v1287_v40 = vld [vmem:[#allocation2 + $0x14] sm:$0xf0]  ;;  %v1149_v41 = vor.u32 %v1315_v36, %v1148_v35  ;;  %v1038_v44 = vld [vmem:[#allocation2 + $0x18] sm:$0xf0] }
  0x1d   : > { %445 = vmatpush.bf16.msra.mxu1 %v1073_v17  ;;  %v1331_v42 = vld [vmem:[#allocation4 + $0xf4] sm:$0xf0]  ;;  %v1140_v46 = vld [vmem:[#allocation4 + $0x60] sm:$0xf]  ;;  %v1313_v48 = vld [vmem:[#allocation4 + $0x64] sm:$0xf0]  ;;  %v1037_v51 = vor.u32 %v1287_v40, %v1036_v39  ;;  %v1041_v57 = vor.u32 %v1286_v43, %v1038_v44 }
  0x1e   : > { %v1213_v45 = vor.u32 %v1331_v42, %v1212_v37  ;;  %v1028_v47 = vld [vmem:[#allocation2] sm:$0xf]  ;;  %672 = vmatpush.bf16.msra.mxu2 %v1149_v41  ;;  %v1329_v50 = vld [vmem:[#allocation4 + $0xe4] sm:$0xf0]  ;;  %v1284_v53 = vld [vmem:[#allocation2 + $0x4] sm:$0xf]  ;;  %v1141_v55 = vor.u32 %v1313_v48, %v1140_v46 }
  0x1f   : > { %v1204_v49 = vld [vmem:[#allocation4 + $0xe0] sm:$0xf]  ;;  %v1285_v52 = vld [vmem:[#allocation2 + $0x4] sm:$0xf0]  ;;  %v1030_v54 = vld [vmem:[#allocation2 + $0x8] sm:$0xf0] }
  0x20   : > { %427 = vmatpush.bf16.msra.mxu0 %v1061_v22  ;;  %691 = vmatpush.bf16.msra.mxu3 %v1213_v45  ;;  %v1205_v56 = vor.u32 %v1329_v50, %v1204_v49  ;;  %v1314_v58 = vld [vmem:[#allocation4 + $0x74] sm:$0xf]  ;;  %v1132_v59 = vld [vmem:[#allocation4 + $0x50] sm:$0xf]  ;;  %v1311_v60 = vld [vmem:[#allocation4 + $0x54] sm:$0xf0]  ;;  %v1029_v4 = vor.u32 %v1285_v52, %v1028_v47  ;;  %v1033_v9 = vor.u32 %v1284_v53, %v1030_v54 }
  0x21   : > { %446 = vmatpush.bf16.msra.mxu1 %v1065_v23  ;;  %v1150_v61 = vld [vmem:[#allocation4 + $0x78] sm:$0xf0]  ;;  %v1196_v62 = vld [vmem:[#allocation4 + $0xd0] sm:$0xf]  ;;  %v1327_v63 = vld [vmem:[#allocation4 + $0xd4] sm:$0xf0]  ;;  %v1133_v3 = vor.u32 %v1311_v60, %v1132_v59 }
  0x22   : > { %v316_v0 = vld [vmem:[%s1548_s21] sm:$0xff]  ;;  %v1330_v1 = vld [vmem:[#allocation4 + $0xf4] sm:$0xf]  ;;  %v1214_v2 = vld [vmem:[#allocation4 + $0xf8] sm:$0xf0]  ;;  %673 = vmatpush.bf16.msra.mxu2 %v1141_v55  ;;  %v1197_v6 = vor.u32 %v1327_v63, %v1196_v62  ;;  %v1153_v10 = vor.u32 %v1314_v58, %v1150_v61 }
  0x23   : > { %v317_v5 = vld [vmem:[%s1548_s21 + $0x8] sm:$0xff]  ;;  %v1124_v7 = vld [vmem:[#allocation4 + $0x40] sm:$0xf]  ;;  %v1217_v13 = vor.u32 %v1330_v1, %v1214_v2  ;;  %v1312_v14 = vld [vmem:[#allocation4 + $0x64] sm:$0xf] }
  0x24   : > { %428 = vmatpush.bf16.msra.mxu0 %v1053_v28  ;;  %692 = vmatpush.bf16.msra.mxu3 %v1205_v56  ;;  %v1309_v8 = vld [vmem:[#allocation4 + $0x44] sm:$0xf0]  ;;  %v1188_v11 = vld [vmem:[#allocation4 + $0xc0] sm:$0xf]  ;;  %v1142_v15 = vld [vmem:[#allocation4 + $0x68] sm:$0xf0]  ;;  %v320_v16 = vpack.c.bf16 %v317_v5, %v316_v0 }
  0x25   : > { %447 = vmatpush.bf16.msra.mxu1 %v1057_v29  ;;  %v1325_v12 = vld [vmem:[#allocation4 + $0xc4] sm:$0xf0]  ;;  %v1328_v17 = vld [vmem:[#allocation4 + $0xe4] sm:$0xf]  ;;  %v1206_v18 = vld [vmem:[#allocation4 + $0xe8] sm:$0xf0]  ;;  %v1125_v19 = vor.u32 %v1309_v8, %v1124_v7  ;;  %v1145_v21 = vor.u32 %v1312_v14, %v1142_v15 }
  0x26   : > { %674 = vmatpush.bf16.msra.mxu2 %v1133_v3  ;;  %v1189_v20 = vor.u32 %v1325_v12, %v1188_v11  ;;  %v1209_v22 = vor.u32 %v1328_v17, %v1206_v18  ;;  %v1310_v23 = vld [vmem:[#allocation4 + $0x54] sm:$0xf]  ;;  %v1134_v24 = vld [vmem:[#allocation4 + $0x58] sm:$0xf0]  ;;  %v1308_v29 = vld [vmem:[#allocation4 + $0x44] sm:$0xf] }
  0x27   : > { %v1326_v25 = vld [vmem:[#allocation4 + $0xd4] sm:$0xf]  ;;  %v1198_v26 = vld [vmem:[#allocation4 + $0xd8] sm:$0xf0]  ;;  %v1137_v27 = vor.u32 %v1310_v23, %v1134_v24  ;;  %v1126_v30 = vld [vmem:[#allocation4 + $0x48] sm:$0xf0] }
  0x28   : > { %429 = vmatpush.bf16.msra.mxu0 %v1045_v34  ;;  %693 = vmatpush.bf16.msra.mxu3 %v1197_v6  ;;  %v1201_v28 = vor.u32 %v1326_v25, %v1198_v26  ;;  %v1324_v31 = vld [vmem:[#allocation4 + $0xc4] sm:$0xf]  ;;  %v1190_v32 = vld [vmem:[#allocation4 + $0xc8] sm:$0xf0]  ;;  %v1129_v33 = vor.u32 %v1308_v29, %v1126_v30  ;;  %v318_v35 = vld [vmem:[%s1548_s21 + $0x10] sm:$0xff] }
  0x29   : > { %448 = vmatpush.bf16.msra.mxu1 %v1049_v38  ;;  %v1193_v34 = vor.u32 %v1324_v31, %v1190_v32  ;;  %v319_v36 = vld [vmem:[%s1548_s21 + $0x18] sm:$0xff]  ;;  %v1116_v38 = vld [vmem:[#allocation4 + $0x30] sm:$0xf]  ;;  %v1306_v43 = vld [vmem:[#allocation4 + $0x34] sm:$0xf] }
  0x2a   : > { %675 = vmatpush.bf16.msra.mxu2 %v1125_v19  ;;  %v321_v37 = vpack.c.bf16 %v319_v36, %v318_v35  ;;  %v1307_v39 = vld [vmem:[#allocation4 + $0x34] sm:$0xf0]  ;;  %v1180_v40 = vld [vmem:[#allocation4 + $0xb0] sm:$0xf]  ;;  %v1118_v44 = vld [vmem:[#allocation4 + $0x38] sm:$0xf0] }
  0x2b   : > { %v1117_v41 = vor.u32 %v1307_v39, %v1116_v38  ;;  %v1323_v42 = vld [vmem:[#allocation4 + $0xb4] sm:$0xf0]  ;;  %v1121_v46 = vor.u32 %v1306_v43, %v1118_v44  ;;  %v1322_v47 = vld [vmem:[#allocation4 + $0xb4] sm:$0xf]  ;;  %v1182_v48 = vld [vmem:[#allocation4 + $0xb8] sm:$0xf0] }
  0x2c   : > { %430 = vmatpush.bf16.msra.mxu0 %v1037_v51  ;;  %694 = vmatpush.bf16.msra.mxu3 %v1189_v20  ;;  %v1181_v45 = vor.u32 %v1323_v42, %v1180_v40  ;;  %v1185_v49 = vor.u32 %v1322_v47, %v1182_v48  ;;  %v1108_v50 = vld [vmem:[#allocation4 + $0x20] sm:$0xf]  ;;  %v1305_v51 = vld [vmem:[#allocation4 + $0x24] sm:$0xf0]  ;;  %v1304_v55 = vld [vmem:[#allocation4 + $0x24] sm:$0xf] }
  0x2d   : > { %449 = vmatpush.bf16.msra.mxu1 %v1041_v57  ;;  %v1109_v52 = vor.u32 %v1305_v51, %v1108_v50  ;;  %v1172_v53 = vld [vmem:[#allocation4 + $0xa0] sm:$0xf]  ;;  %v1321_v54 = vld [vmem:[#allocation4 + $0xa4] sm:$0xf0]  ;;  %v1110_v57 = vld [vmem:[#allocation4 + $0x28] sm:$0xf0] }
  0x2e   : > { %676 = vmatpush.bf16.msra.mxu2 %v1117_v41  ;;  %v1173_v56 = vor.u32 %v1321_v54, %v1172_v53  ;;  %v1320_v58 = vld [vmem:[#allocation4 + $0xa4] sm:$0xf]  ;;  %v1174_v59 = vld [vmem:[#allocation4 + $0xa8] sm:$0xf0]  ;;  %v1113_v60 = vor.u32 %v1304_v55, %v1110_v57  ;;  %v1100_v62 = vld [vmem:[#allocation4 + $0x10] sm:$0xf] }
  0x2f   : > { %v1177_v61 = vor.u32 %v1320_v58, %v1174_v59  ;;  %v1303_v63 = vld [vmem:[#allocation4 + $0x14] sm:$0xf0]  ;;  %v1164_v0 = vld [vmem:[#allocation4 + $0x90] sm:$0xf]  ;;  %v1302_v3 = vld [vmem:[#allocation4 + $0x14] sm:$0xf] }
  0x30   : > { %431 = vmatpush.bf16.msra.mxu0 %v1029_v4  ;;  %695 = vmatpush.bf16.msra.mxu3 %v1181_v45  ;;  %v1101_v1 = vor.u32 %v1303_v63, %v1100_v62  ;;  %v1319_v2 = vld [vmem:[#allocation4 + $0x94] sm:$0xf0]  ;;  %v1102_v4 = vld [vmem:[#allocation4 + $0x18] sm:$0xf0]  ;;  %v1318_v7 = vld [vmem:[#allocation4 + $0x94] sm:$0xf] }
  0x31   : > { %450 = vmatpush.bf16.msra.mxu1 %v1033_v9  ;;  %v1165_v5 = vor.u32 %v1319_v2, %v1164_v0  ;;  %v1105_v6 = vor.u32 %v1302_v3, %v1102_v4  ;;  %v1166_v8 = vld [vmem:[#allocation4 + $0x98] sm:$0xf0]  ;;  %v1301_v11 = vld [vmem:[#allocation4 + $0x4] sm:$0xf0]  ;;  %v1156_v12 = vld [vmem:[#allocation4 + $0x80] sm:$0xf] }
  0x32   : > { %677 = vmatpush.bf16.msra.mxu2 %v1109_v52  ;;  %v1169_v9 = vor.u32 %v1318_v7, %v1166_v8  ;;  %v1317_v14 = vld [vmem:[#allocation4 + $0x84] sm:$0xf0]  ;;  %v1300_v15 = vld [vmem:[#allocation4 + $0x4] sm:$0xf]  ;;  %v1158_v20 = vld [vmem:[#allocation4 + $0x88] sm:$0xf0] }
  0x33   : > { %432 = vmatmul.bf16.vlgmr.msra.gmra.mxu0 %v320_v16  ;;  %v1157_v17 = vor.u32 %v1317_v14, %v1156_v12  ;;  %v1316_v19 = vld [vmem:[#allocation4 + $0x84] sm:$0xf]  ;;  %v1347_v24 = vld [vmem:[%s1628_s5 + $0x78] sm:$0xff]  ;;  %v1345_v31 = vld [vmem:[%s1628_s5 + $0x68] sm:$0xff] }
  0x34   : > { %710 = vmatpush.bf16.msrb.mxu0 %v1153_v10  ;;  %451 = vmatmul.bf16.vlgmr.msra.gmra.mxu1 %v320_v16  ;;  %v1092_v10 = vld [vmem:[#allocation4] sm:$0xf]  ;;  %v1094_v16 = vld [vmem:[#allocation4 + $0x8] sm:$0xf0]  ;;  %v1339_v25 = vld [vmem:[%s1628_s5 + $0x38] sm:$0xff] }
  0x35   : > { %729 = vmatpush.bf16.msrb.mxu1 %v1217_v13  ;;  %696 = vmatpush.bf16.msra.mxu3 %v1173_v56  ;;  %v1093_v13 = vor.u32 %v1301_v11, %v1092_v10  ;;  %v1097_v18 = vor.u32 %v1300_v15, %v1094_v16  ;;  %v1337_v32 = vld [vmem:[%s1628_s5 + $0x28] sm:$0xff]  ;;  %v1344_v39 = vld [vmem:[%s1628_s5 + $0x60] sm:$0xff]  ;;  %v1342_v62 = vld [vmem:[%s1628_s5 + $0x50] sm:$0xff] }
  0x36   : > { %678 = vmatpush.bf16.msra.mxu2 %v1101_v1  ;;  %v1335_v63 = vld [vmem:[%s1628_s5 + $0x18] sm:$0xff]  ;;  %v1341_v0 = vld [vmem:[%s1628_s5 + $0x48] sm:$0xff]  ;;  %v1334_v1 = vld [vmem:[%s1628_s5 + $0x10] sm:$0xff] }
  0x37   : > { %v1340_v2 = vld [vmem:[%s1628_s5 + $0x40] sm:$0xff]  ;;  %v1333_v3 = vld [vmem:[%s1628_s5 + $0x8] sm:$0xff] }
  0x38   : > { %711 = vmatpush.bf16.msrb.mxu0 %v1145_v21  ;;  %v1161_v21 = vor.u32 %v1316_v19, %v1158_v20  ;;  %v1332_v4 = vld [vmem:[%s1628_s5] sm:$0xff] }
  0x39   : > { %730 = vmatpush.bf16.msrb.mxu1 %v1209_v22  ;;  %697 = vmatpush.bf16.msra.mxu3 %v1165_v5  ;;  %v338_v22 = vld [vmem:[%s1625_s2] sm:$0x3] }
  0x3a   : > { %679 = vmatpush.bf16.msra.mxu2 %v1093_v13  ;;  %v340_v29 = vperm.slane %v338_v22, 0  ;;  %v341_v30 = vperm.slane %v338_v22, 1  ;;  %v506_v5 = vld [vmem:[%s1627_s4] sm:$0x3] }
  0x3b   : > { %v509_v7 = vperm.slane %v506_v5, 1  ;;  %v508_v11 = vperm.slane %v506_v5, 0 }
  0x3c   : > { %712 = vmatpush.bf16.msrb.mxu0 %v1137_v27  ;;  %v1346_v27 = vld [vmem:[%s1628_s5 + $0x70] sm:$0xff] }
  0x3d   : > { %731 = vmatpush.bf16.msrb.mxu1 %v1201_v28  ;;  %698 = vmatpush.bf16.msra.mxu3 %v1157_v17  ;;  %v1338_v28 = vld [vmem:[%s1628_s5 + $0x30] sm:$0xff] }
  0x3e   : > { %892 = vmatpush.bf16.msrb.mxu2 %v1339_v25 }
  0x40   : > { %713 = vmatpush.bf16.msrb.mxu0 %v1129_v33 }
  0x41   : > { %732 = vmatpush.bf16.msrb.mxu1 %v1193_v34  ;;  %911 = vmatpush.bf16.msrb.mxu3 %v1347_v24 }
  0x42   : > { %893 = vmatpush.bf16.msrb.mxu2 %v1338_v28 }
  0x43   : > { %437 = vmatmul.bf16.gmra.mxu0 %v321_v37 }
  0x44   : > { %456 = vmatmul.bf16.gmra.mxu1 %v321_v37  ;;  %714 = vmatpush.bf16.msrb.mxu0 %v1121_v46 }
  0x45   : > { %733 = vmatpush.bf16.msrb.mxu1 %v1185_v49  ;;  %912 = vmatpush.bf16.msrb.mxu3 %v1346_v27 }
  0x46   : > { %894 = vmatpush.bf16.msrb.mxu2 %v1337_v32 }
  0x48   : > { %715 = vmatpush.bf16.msrb.mxu0 %v1113_v60  ;;  %v1343_v60 = vld [vmem:[%s1628_s5 + $0x58] sm:$0xff] }
  0x49   : > { %734 = vmatpush.bf16.msrb.mxu1 %v1177_v61  ;;  %913 = vmatpush.bf16.msrb.mxu3 %v1345_v31  ;;  %v1336_v61 = vld [vmem:[%s1628_s5 + $0x20] sm:$0xff] }
  0x4a   : > { %895 = vmatpush.bf16.msrb.mxu2 %v1336_v61 }
  0x4c   : > { %716 = vmatpush.bf16.msrb.mxu0 %v1105_v6 }
  0x4d   : > { %735 = vmatpush.bf16.msrb.mxu1 %v1169_v9  ;;  %914 = vmatpush.bf16.msrb.mxu3 %v1344_v39 }
  0x4e   : > { %896 = vmatpush.bf16.msrb.mxu2 %v1335_v63 }
  0x50   : > { %717 = vmatpush.bf16.msrb.mxu0 %v1097_v18 }
  0x51   : > { %736 = vmatpush.bf16.msrb.mxu1 %v1161_v21  ;;  %915 = vmatpush.bf16.msrb.mxu3 %v1343_v60 }
  0x52   : > { %897 = vmatpush.bf16.msrb.mxu2 %v1334_v1 }
  0x55   : > { %916 = vmatpush.bf16.msrb.mxu3 %v1342_v62 }
  0x56   : > { %898 = vmatpush.bf16.msrb.mxu2 %v1333_v3 }
  0x59   : > { %917 = vmatpush.bf16.msrb.mxu3 %v1341_v0 }
  0x5a   : > { %899 = vmatpush.bf16.msrb.mxu2 %v1332_v4 }
  0x5d   : > { %918 = vmatpush.bf16.msrb.mxu3 %v1340_v2 }
  0xb0   : > { %v433_v23 = vpop.f32.mrf.mxu0 }
  0xb1   : > { %v452_v26 = vpop.f32.mrf.mxu1  ;;  %v434_v33 = vadd.f32 %v433_v23, %v340_v29 }
  0xb2   : > { %v453_v34 = vadd.f32 %v452_v26, %v341_v30 }
  0xb3   : > { %v462_v40 = vmax.f32 %v434_v33, 0.0 }
  0xb4   : > { %v463_v42 = vmax.f32 %v453_v34, 0.0 }
  0xb8   : > { %v435_v35 = vpop.f32.mrf.mxu0 }
  0xb9   : > { %v436_v36 = vadd.f32 %v435_v35, %v340_v29  ;;  %v454_v37 = vpop.f32.mrf.mxu1 }
  0xba   : > { %v455_v38 = vadd.f32 %v454_v37, %v341_v30 }
  0xbb   : > { %v464_v41 = vmax.f32 %v436_v36, 0.0 }
  0xbc   : > { %v465_v43 = vmax.f32 %v455_v38, 0.0 }
  0xbd   : > { %v470_v44 = vpack.c.bf16 %v464_v41, %v462_v40 }
  0xbe   : > { %v471_v45 = vpack.c.bf16 %v465_v43, %v463_v42 }
  0xbf   : > { %680 = vmatmul.bf16.vlgmr.msra.gmra.mxu2 %v470_v44  ;;  %718 = vmatmul.bf16.vlgmr.msrb.gmra.mxu0 %v470_v44 }
  0xc0   : > { %699 = vmatmul.bf16.vlgmr.msra.gmra.mxu3 %v471_v45  ;;  %737 = vmatmul.bf16.vlgmr.msrb.gmra.mxu1 %v471_v45  ;;  %v438_v46 = vpop.f32.mrf.mxu0 }
  0xc1   : > { %v457_v47 = vpop.f32.mrf.mxu1  ;;  %v439_v48 = vadd.f32 %v438_v46, %v340_v29 }
  0xc2   : > { %v458_v49 = vadd.f32 %v457_v47, %v341_v30 }
  0xc3   : > { %v466_v54 = vmax.f32 %v439_v48, 0.0 }
  0xc4   : > { %v467_v56 = vmax.f32 %v458_v49, 0.0 }
  0xc8   : > { %v440_v50 = vpop.f32.mrf.mxu0 }
  0xc9   : > { %v441_v51 = vadd.f32 %v440_v50, %v340_v29  ;;  %v459_v52 = vpop.f32.mrf.mxu1 }
  0xca   : > { %v460_v53 = vadd.f32 %v459_v52, %v341_v30 }
  0xcb   : > { %v468_v55 = vmax.f32 %v441_v51, 0.0 }
  0xcc   : > { %v469_v57 = vmax.f32 %v460_v53, 0.0  ;;  %v1379_v53 = vld [vmem:[%s1629_s6] ss:$0 sm:$0xff] }
  0xcd   : > { %v472_v58 = vpack.c.bf16 %v468_v55, %v466_v54 }
  0xce   : > { %v473_v59 = vpack.c.bf16 %v469_v57, %v467_v56 }
  0xcf   : > { %685 = vmatmul.bf16.gmra.mxu2 %v472_v58  ;;  %723 = vmatmul.bf16.gmra.mxu0 %v472_v58 }
  0xd0   : > { %704 = vmatmul.bf16.gmra.mxu3 %v473_v59  ;;  %742 = vmatmul.bf16.gmra.mxu1 %v473_v59 }
 0x13c   : > { %v719_v6 = vpop.f32.mrf.mxu0 }
 0x13d   : > { %v738_v8 = vpop.f32.mrf.mxu1  ;;  %v720_v9 = vadd.f32 %v719_v6, %v509_v7 }
 0x13f   : > { %v739_v14 = vadd.f32 %v738_v8, %v720_v9 }
 0x141   : > { %v749_v19 = vmax.f32 %v739_v14, 0.0 }
 0x142   : > { %v681_v10 = vpop.f32.mrf.mxu2 }
 0x143   : > { %v700_v12 = vpop.f32.mrf.mxu3  ;;  %v682_v17 = vadd.f32 %v681_v10, %v508_v11 }
 0x144   : > { %v721_v13 = vpop.f32.mrf.mxu0 }
 0x145   : > { %v722_v15 = vadd.f32 %v721_v13, %v509_v7  ;;  %v740_v16 = vpop.f32.mrf.mxu1  ;;  %v701_v22 = vadd.f32 %v700_v12, %v682_v17 }
 0x147   : > { %v741_v18 = vadd.f32 %v740_v16, %v722_v15  ;;  %v748_v29 = vmax.f32 %v701_v22, 0.0 }
 0x149   : > { %v751_v20 = vmax.f32 %v741_v18, 0.0 }
 0x14a   : > { %v683_v21 = vpop.f32.mrf.mxu2 }
 0x14b   : > { %v757_v23 = vpack.c.bf16 %v751_v20, %v749_v19  ;;  %v684_v24 = vadd.f32 %v683_v21, %v508_v11  ;;  %v702_v25 = vpop.f32.mrf.mxu3 }
 0x14c   : > { %v724_v26 = vpop.f32.mrf.mxu0 }
 0x14d   : > { %v703_v27 = vadd.f32 %v702_v25, %v684_v24  ;;  %v743_v28 = vpop.f32.mrf.mxu1  ;;  %919 = vmatmul.bf16.vlgmr.msrb.gmra.mxu3 %v757_v23  ;;  %v725_v32 = vadd.f32 %v724_v26, %v509_v7 }
 0x14f   : > { %v750_v30 = vmax.f32 %v703_v27, 0.0  ;;  %v744_v36 = vadd.f32 %v743_v28, %v725_v32 }
 0x151   : > { %v756_v31 = vpack.c.bf16 %v750_v30, %v748_v29  ;;  %v753_v41 = vmax.f32 %v744_v36, 0.0 }
 0x152   : > { %v686_v33 = vpop.f32.mrf.mxu2 }
 0x153   : > { %v705_v34 = vpop.f32.mrf.mxu3  ;;  %900 = vmatmul.bf16.vlgmr.msrb.gmra.mxu2 %v756_v31  ;;  %v687_v39 = vadd.f32 %v686_v33, %v508_v11 }
 0x154   : > { %v726_v35 = vpop.f32.mrf.mxu0 }
 0x155   : > { %v727_v37 = vadd.f32 %v726_v35, %v509_v7  ;;  %v745_v38 = vpop.f32.mrf.mxu1  ;;  %v706_v44 = vadd.f32 %v705_v34, %v687_v39 }
 0x157   : > { %v746_v40 = vadd.f32 %v745_v38, %v727_v37  ;;  %v752_v49 = vmax.f32 %v706_v44, 0.0 }
 0x159   : > { %v755_v42 = vmax.f32 %v746_v40, 0.0 }
 0x15a   : > { %v688_v43 = vpop.f32.mrf.mxu2 }
 0x15b   : > { %v689_v45 = vadd.f32 %v688_v43, %v508_v11  ;;  %v759_v46 = vpack.c.bf16 %v755_v42, %v753_v41  ;;  %v707_v47 = vpop.f32.mrf.mxu3 }
 0x15d   : > { %v708_v48 = vadd.f32 %v707_v47, %v689_v45  ;;  %924 = vmatmul.bf16.gmra.mxu3 %v759_v46 }
 0x15f   : > { %v754_v50 = vmax.f32 %v708_v48, 0.0 }
 0x161   : > { %v758_v51 = vpack.c.bf16 %v754_v50, %v752_v49 }
 0x163   : > { %905 = vmatmul.bf16.gmra.mxu2 %v758_v51 }
 0x1d0   : > { %v920_v52 = vpop.f32.mrf.mxu3 }
 0x1d6   : > { %v901_v54 = vpop.f32.mrf.mxu2 }
 0x1d7   : > { %v902_v55 = vadd.f32 %v1379_v53, %v901_v54 }
 0x1d8   : > { %v922_v57 = vpop.f32.mrf.mxu3 }
 0x1d9   : > { %v921_v56 = vadd.f32 %v920_v52, %v902_v55 }
 0x1db   : > { %931 = vst.msk [vmem:[%s314_s22] sm:$0xff] %vm930_vm0, %v921_v56 }
 0x1de   : > { %v903_v58 = vpop.f32.mrf.mxu2 }
 0x1df   : > { %v904_v59 = vadd.f32 %v1379_v53, %v903_v58 }
 0x1e0   : > { %v925_v61 = vpop.f32.mrf.mxu3 }
 0x1e1   : > { %v923_v60 = vadd.f32 %v922_v57, %v904_v59 }
 0x1e3   : > { %932 = vst.msk [vmem:[%s314_s22 + $0x8] sm:$0xff] %vm930_vm0, %v923_v60 }
 0x1e6   : > { %v906_v62 = vpop.f32.mrf.mxu2 }
 0x1e7   : > { %v907_v63 = vadd.f32 %v1379_v53, %v906_v62 }
 0x1e8   : > { %v927_v3 = vpop.f32.mrf.mxu3 }
 0x1e9   : > { %v926_v0 = vadd.f32 %v925_v61, %v907_v63 }
 0x1eb   : > { %933 = vst.msk [vmem:[%s314_s22 + $0x10] sm:$0xff] %vm930_vm0, %v926_v0 }
 0x1ee   : > { %v908_v1 = vpop.f32.mrf.mxu2 }
 0x1ef   : > { %v909_v2 = vadd.f32 %v1379_v53, %v908_v1 }
 0x1f1   : > { %v928_v4 = vadd.f32 %v927_v3, %v909_v2 }
 0x1f3   : > { %934 = vst.msk [vmem:[%s314_s22 + $0x18] sm:$0xff] %vm930_vm0, %v928_v4 }
 0x1f4 PF: > { %s19_s24 = sadd.s32 1, %s1454_s24  }
 0x1f5   : > { %p16_p7 = scmp.ge.s32.totalorder %s19_s24, 6  }
 0x1f7   :  { %18 = sbr.rel (!%p16_p7) target bundleno = 2 (0x2), region = 87 }
 0x1fc   :  { %957 = vsyncpa [#allocation3], 1 }
 0x1fd   :  { %959 = vsyncpa [#allocation3 + $0x1], 1 }
 0x1fe   :  { %960 = vsyncpa [#allocation5], 1 }

</bundles_post_ra>
